<compile_context>
chip_gen: v6e
topology: v6e:2x2x1
jax: 0.10.0
libtpu: 0.0.40
codegen_flags: <defaults>
</compile_context>

<pallas_src>
import jax
import jax.numpy as jnp
from jax.experimental import pallas as pl
from jax.experimental.pallas import tpu as pltpu

# Below this many tasks the op is pure launch overhead as a custom call; emit
# plain jnp so XLA fuses it into the surrounding loss graph instead.
_FUSE_THRESHOLD = 4096

# Task axis lives on lanes inside the kernel; a handful of vregs covers any
# realistic multi-task setup.  (For num in the thousands, folding the task
# axis onto 8 sublanes would cut vreg/VPU/EUP issues ~8x — irrelevant here.)
MAX_TASKS = 8 * 128


def _awl_kernel(pl_ref, out_ref):
    # pl_ref: (2, num) f32 — row 0 = params, row 1 = losses.
    p = pl_ref[0:1, :]                     # (1, num)
    l = pl_ref[1:2, :]                     # (1, num)
    p2 = p * p
    # 0.5 / p^2 * loss + log(1 + p^2); reciprocal + log1p both run on the EUP.
    contrib = 0.5 * l * pl.reciprocal(p2) + jnp.log1p(p2)
    out_ref[...] = jnp.sum(contrib, axis=-1, keepdims=True)   # (1, 1)


def _awl_forward_pallas(params, losses):
    num = params.shape[0]
    assert losses.shape == (num,), (params.shape, losses.shape)
    assert num <= MAX_TASKS, f"num={num} exceeds single-row limit {MAX_TASKS}"

    # One packed (2, num) input -> one input DMA.  (If the caller can supply
    # the stacked array directly, this stack disappears entirely.)
    packed = jnp.stack(
        [params.astype(jnp.float32), losses.astype(jnp.float32)], axis=0
    )  # (2, num)

    out = pl.pallas_call(
        _awl_kernel,
        out_shape=jax.ShapeDtypeStruct((1, 1), jnp.float32),
        in_specs=[pl.BlockSpec(memory_space=pltpu.VMEM)],
        out_specs=pl.BlockSpec(memory_space=pltpu.VMEM),
        cost_estimate=pl.CostEstimate(
            flops=5 * num,
            transcendentals=2 * num,
            bytes_accessed=8 * num + 4,
        ),
    )(packed)
    # Keep it as a reshape of the (1,1) tile (no slice HLO around the call).
    return out.reshape(())


@jax.custom_vjp
def automatic_weighted_loss_pallas(params, losses):
    """Pallas-kernel path.  params: (num,) learnable weights; losses: (num,)
    per-task losses (the stacked `*x` of the PyTorch forward).  Scalar f32."""
    return _awl_forward_pallas(params, losses)


def _awl_fwd(params, losses):
    return _awl_forward_pallas(params, losses), (params, losses)


def _awl_bwd(residuals, g):
    params, losses = residuals
    p = params.astype(jnp.float32)
    l = losses.astype(jnp.float32)
    p2 = p * p
    d_params = g * (-l / (p2 * p) + 2.0 * p / (1.0 + p2))
    d_losses = g * (0.5 / p2)
    return d_params.astype(params.dtype), d_losses.astype(losses.dtype)


automatic_weighted_loss_pallas.defvjp(_awl_fwd, _awl_bwd)


def _awl_fused(params, losses):
    # Pure-jnp epilogue; XLA fuses this into whatever produced the losses.
    p2 = params.astype(jnp.float32) ** 2
    return jnp.sum(0.5 / p2 * losses.astype(jnp.float32) + jnp.log1p(p2))


def automatic_weighted_loss(params, losses):
    """Public entry point.  For small num (the overwhelmingly common case) a
    standalone pallas_call would be pure dispatch overhead, so emit fusable
    jnp; fall back to the Pallas kernel only for very wide task vectors."""
    num = params.shape[0]
    if num <= _FUSE_THRESHOLD:
        return _awl_fused(params, losses)
    # TODO(synk): for num > MAX_TASKS, fold the task axis onto 8 sublanes
    # ((8, ceil(num/8)) layout) before the kernel instead of one lane row.
    return automatic_weighted_loss_pallas(params, losses)


def _reference(params, losses):
    p2 = params.astype(jnp.float32) ** 2
    return jnp.sum(0.5 / p2 * losses.astype(jnp.float32) + jnp.log(1.0 + p2))


if __name__ == "__main__":
    key = jax.random.PRNGKey(0)

    # --- Case 1: the module default, AutomaticWeightedLoss(num=2) -----------
    num = 2
    params = jnp.ones((num,), jnp.float32)          # torch.ones(num) init
    losses = jax.random.uniform(key, (num,), jnp.float32, minval=0.5, maxval=3.0)

    # Exercise the Pallas kernel directly (forward).
    out = jax.block_until_ready(automatic_weighted_loss_pallas(params, losses))
    ref = _reference(params, losses)
    assert jnp.allclose(out, ref, rtol=1e-5, atol=1e-5), (out, ref)

    # Grads flow through the pallas_call via custom_vjp (params are learnable).
    g_p, g_l = jax.grad(automatic_weighted_loss_pallas, argnums=(0, 1))(params, losses)
    r_p, r_l = jax.grad(_reference, argnums=(0, 1))(params, losses)
    jax.block_until_ready((g_p, g_l))
    assert jnp.allclose(g_p, r_p, rtol=1e-5, atol=1e-5), (g_p, r_p)
    assert jnp.allclose(g_l, r_l, rtol=1e-5, atol=1e-5), (g_l, r_l)

    # The gated public API (fused jnp path at this size) agrees too.
    out_fused = jax.block_until_ready(automatic_weighted_loss(params, losses))
    assert jnp.allclose(out_fused, ref, rtol=1e-5, atol=1e-5), (out_fused, ref)

    # --- Case 2: awkward width (not a multiple of 128) through the kernel ---
    k1, k2 = jax.random.split(key)
    num2 = 130
    params2 = 0.5 + jax.random.uniform(k1, (num2,), jnp.float32)   # positive
    losses2 = jax.random.uniform(k2, (num2,), jnp.float32, minval=0.1, maxval=2.0)
    out2 = jax.block_until_ready(automatic_weighted_loss_pallas(params2, losses2))
    ref2 = _reference(params2, losses2)
    assert jnp.allclose(out2, ref2, rtol=1e-5, atol=1e-4), (out2, ref2)

    print("KERNEL_OK")
</pallas_src>

<mosaic_0001>
module attributes {stable_mosaic.version = 11 : i64} {
  func.func @_awl_kernel(%arg0: memref<2x2xf32, #tpu.memory_space<vmem>>, %arg1: memref<1x1xf32, #tpu.memory_space<vmem>>) attributes {dimension_semantics = [], scalar_prefetch = 0 : i64, scratch_operands = 0 : i64, tpu.core_type = #tpu.core_type<tc>} {
    %c0 = arith.constant 0 : index
    %c0_0 = arith.constant 0 : index
    %0 = vector.load %arg0[%c0, %c0_0] : memref<2x2xf32, #tpu.memory_space<vmem>>, vector<1x2xf32>
    %c1 = arith.constant 1 : index
    %c0_1 = arith.constant 0 : index
    %1 = vector.load %arg0[%c1, %c0_1] : memref<2x2xf32, #tpu.memory_space<vmem>>, vector<1x2xf32>
    %2 = arith.mulf %0, %0 : vector<1x2xf32>
    %cst = arith.constant 5.000000e-01 : f32
    %3 = vector.broadcast %cst : f32 to vector<1x2xf32>
    %4 = arith.mulf %3, %1 : vector<1x2xf32>
    %5 = tpu.reciprocal %2 : vector<1x2xf32> -> vector<1x2xf32>
    %6 = arith.mulf %4, %5 : vector<1x2xf32>
    %7 = math.log1p %2 : vector<1x2xf32>
    %8 = arith.addf %6, %7 : vector<1x2xf32>
    %cst_2 = arith.constant dense<0.000000e+00> : vector<1xf32>
    %9 = vector.multi_reduction <add>, %8, %cst_2 [1] : vector<1x2xf32> to vector<1xf32>
    %10 = vector.shape_cast %9 : vector<1xf32> to vector<1x1xf32>
    %c0_3 = arith.constant 0 : index
    %c0_4 = arith.constant 0 : index
    %11 = vector.load %arg1[%c0_3, %c0_4] : memref<1x1xf32, #tpu.memory_space<vmem>>, vector<1x1xf32>
    tpu.vector_store %arg1[%c0_3, %c0_4], %10 {strides = array<i32>} : memref<1x1xf32, #tpu.memory_space<vmem>>, vector<1x1xf32>,
    return
  }
}

</mosaic_0001>

<bundles_post_ra>
// kernel: tpu_custom_call.1
= control target key start
LH: loop header
LB: loop body
LE: loop exit
PB: predicated region body
PF: predicated region fallthrough
CT: control target
= control target key end

     0   :  { %6 = vsyncpa [#allocation3], 0  ;;  %s126_s0 = inlined_call_operand.hbm [shape: f32[2,2], index: 0, kind: input, shape index: {}]   ;;  %s127_s1 = inlined_call_operand.hbm [shape: f32[1,1], index: 1, kind: output, shape index: {}]  }
   0x1   :  { %7 = vsyncpa [#allocation4], 0  ;;  %s108_s6 = smov [#allocation2]  }
   0x2   :  { %s14_s7 = sshll.u32 %s108_s6, 4  ;;  %s15_s7 = int_to_ptr.vmem [resolvable:$true] %s14_s7 }
   0x3   :  { %s72_s8 = scalar_lea.vmem %s15_s7, 32  ;;  %p77_p1 = scmp.lt.s32.totalorder %s15_s7, %s15_s7 }
   0x4   :  { %p73_p0 = scmp.ne.s32.totalorder %s15_s7, %s72_s8  ;;  %p78_p2 = scmp.lt.s32.totalorder %s72_s8, %s72_s8 }
   0x6   :  { %p79_p3 = por %p78_p2, %p77_p1 }
   0x8   :  { %p80_p4 = pnand %p79_p3, %p73_p0 }
   0xa   :  { %83 = shalt.err (!%p80_p4)
}
   0xb   :  { %17 = dma.hbm_to_vmem [thread:$0]  %s126_s0, 32, %s15_s7, [#allocation3]  }
   0xc   :  { %104 = dma.done.wait [#allocation3], 32  }
   0xd   :  { %105 = vsyncadd [#allocation3], 4294967264  ;;  %v21_v0 = vld [vmem:[#allocation2] sm:$0x1]  ;;  %v22_v4 = vld [vmem:[#allocation2 + $0x1] sm:$0x1] }
   0xe   :  { %v23_v1 = vmul.f32 %v21_v0, %v21_v0  ;;  %v24_v6 = vmul.f32 0.5, %v22_v4  ;;  %vm37_vm1 = vcmask 8192   ;;  %s109_s0 = smov [#allocation5]   ;;  %vm41_vm2 = vcmask 0  }
   0xf   :  { %s49_s11 = sshll.u32 %s109_s0, 4  ;;  %s50_s11 = int_to_ptr.vmem [resolvable:$true] %s49_s11 }
  0x10   :  { %60 = vrcp.f32 %v23_v1  ;;  %v27_v2 = vadd.f32 1.0, %v23_v1  ;;  %v30_v3 = vmul.f32 -0.5, %v23_v1  ;;  %v33_v7 = vand.u32 2147483647, %v23_v1  ;;  %s84_s12 = scalar_lea.vmem %s50_s11, 16  ;;  %s88_s13 = scalar_lea.vmem %s50_s11, 32 }
  0x11   :  { %p85_p5 = scmp.ne.s32.totalorder %s50_s11, %s84_s12  ;;  %p89_p6 = scmp.lt.s32.totalorder %s50_s11, %s50_s11 }
  0x12   :  { %62 = vlog2.f32 %v27_v2  ;;  %v31_v5 = vadd.f32 1.0, %v30_v3  ;;  %vm34_vm0 = vcmp.lt.f32.partialorder %v33_v7, 0.0004427343  ;;  %p90_p7 = scmp.lt.s32.totalorder %s88_s13, %s84_s12 }
  0x14   :  { %v32_v9 = vmul.f32 %v31_v5, %v23_v1  ;;  %p91_p8 = por %p90_p7, %p89_p6 }
  0x16   :  { %p92_p9 = pnand %p91_p8, %p85_p5 }
  0x1d   :  { %v61_v8 = vpop.eup %60 }
  0x1e   :  { %v26_v11 = vmul.f32 %v61_v8, %v24_v6 }
  0x1f   :  { %v63_v10 = vpop.eup %62 }
  0x20   :  { %v29_v12 = vmul.f32 0.6931472, %v63_v10 }
  0x22   :  { %v35_v13 = vsel %vm34_vm0, %v32_v9, %v29_v12 }
  0x23   :  { %v36_v14 = vadd.f32 %v35_v13, %v26_v11 }
  0x25   :  { %v38_v15 = vsel %vm37_vm1, %v36_v14, 0.0 }
  0x26   :  { %39 = vadd.xlane.f32.xlu0 %v38_v15 }
  0xaf   :  { %v40_v16 = vpop.xlane.xlu0 %39 }
  0xb0   :  { %42 = vst.msk [vmem:[#allocation5] sm:$0x1] %vm41_vm2, %v40_v16 }
  0xb1   :  { %95 = shalt.err (!%p92_p9)
}
  0xb2   :  { %52 = dma.vmem_to_hbm [thread:$0]  %s50_s11, 16, %s127_s1, [#allocation4]  }
  0xb3   :  { %106 = dma.done.wait [#allocation4], 16  }
  0xb4   :  { %107 = vsyncadd [#allocation4], 4294967280 }
  0xb5   :  { %56 = vsyncpa [#allocation3], 1 }
  0xb6   :  { %57 = vsyncpa [#allocation4], 1 }

</bundles_post_ra>
